<compile_context>
chip_gen: v5e
topology: v5e:2x2
jax: 0.10.0
libtpu: 0.0.40
codegen_flags: <defaults>
</compile_context>

<pallas_src>
import functools

import jax
import jax.numpy as jnp
from jax import lax
from jax.experimental import pallas as pl
from jax.experimental.pallas import tpu as pltpu


def _round_up(x, m):
    return (x + m - 1) // m * m


def _choose_tb(B):
    """Batch tile: full-dim for tiny batches, else 128..512 with >=4 steps for big B,
    preferring a tile that divides B exactly (avoids the pad HBM pass)."""
    if B <= 128:
        return B
    target = min(512, max(128, _round_up(pl.cdiv(B, 8), 8)))
    if B % 8 == 0:
        for cand in range(target, 127, -8):
            if B % cand == 0:
                return cand
    return target


def _choose_sub_tile(tb):
    """In-kernel row sub-tile (128-256 rows) so epilogue/MXU work can overlap."""
    if tb <= 256:
        return tb
    for s in range(256, 7, -8):
        if tb % s == 0:
            return s
    return tb


def _interaction_mlp_kernel(*refs, matmul_dtype, fused, sub_tile):
    if fused:
        x2d_ref, x3d_ref, w1_ref, b1_ref, w2_ref, b2_ref, o_ref = refs
    else:
        x2d_ref, x3d_ref, w1a_ref, w1b_ref, b1_ref, w2_ref, b2_ref, o_ref = refs

    num_sub = o_ref.shape[0] // sub_tile

    def body(s, carry):
        r = pl.multiple_of(s * sub_tile, sub_tile)
        x2d = x2d_ref[pl.ds(r, sub_tile), :].astype(matmul_dtype)
        x3d = x3d_ref[pl.ds(r, sub_tile), :].astype(matmul_dtype)

        # Layer 1: [x2d | x3d] @ W1^T + b1.
        if fused:
            # Small E: one K=2E matmul fills the MXU depth; the concat is a VMEM-only
            # copy of the small activation sub-tile (no HBM traffic).
            x = jnp.concatenate([x2d, x3d], axis=-1)
            h = jnp.dot(x, w1_ref[...], preferred_element_type=jnp.float32)
        else:
            # Large E: split-K pair, no concat anywhere.
            h = jnp.dot(x2d, w1a_ref[...], preferred_element_type=jnp.float32)
            h = h + jnp.dot(x3d, w1b_ref[...], preferred_element_type=jnp.float32)
        h = jnp.maximum(h + b1_ref[...], 0.0)

        # Layer 2: Linear -> Dropout(p=0.0, identity) -> Identity normalizer -> ReLU.
        h2 = jnp.dot(h.astype(matmul_dtype), w2_ref[...],
                     preferred_element_type=jnp.float32)
        h2 = jnp.maximum(h2 + b2_ref[...], 0.0)
        o_ref[pl.ds(r, sub_tile), :] = h2.astype(o_ref.dtype)
        return carry

    # Unrolled so the LLO scheduler can co-issue chunk k's VPU epilogue with
    # chunk k+1's MXU pushes.
    lax.fori_loop(0, num_sub, body, 0, unroll=True)


def interaction_mlp(rep_2d, rep_3d, w1t, b1, w2t, b2, *, tb=None,
                    matmul_dtype=jnp.bfloat16, out_dtype=None,
                    fuse_k_threshold=256):
    """Pallas InteractionMLP.forward (cat aggregation, 2 layers).

    w1t / w2t are the PyTorch Linear weights already transposed to (in, out), so the
    hot path is a plain x @ Wt MXU matmul (matches y = x @ W.T + b).
    matmul_dtype=bfloat16 (default) runs the MXU at full rate with f32 accumulation;
    pass jnp.float32 explicitly when bit-strict numerics are required.
    """
    B, E = rep_2d.shape
    D = 2 * E
    assert rep_3d.shape == (B, E)
    assert w1t.shape == (D, D) and w2t.shape == (D, D)
    assert b1.shape == (D,) and b2.shape == (D,)

    out_dtype = rep_2d.dtype if out_dtype is None else out_dtype

    if tb is None:
        tb = _choose_tb(B)
    sub_tile = _choose_sub_tile(tb)

    # Ragged batch: _choose_tb prefers a tile that divides B exactly (no extra HBM
    # pass).  When padding is unavoidable, fuse it with the matmul-dtype cast so the
    # single extra pass also halves the kernel's streamed input bytes.
    B_pad = _round_up(B, tb)
    if B_pad != B:
        pad = ((0, B_pad - B), (0, 0))
        rep_2d = jnp.pad(rep_2d.astype(matmul_dtype), pad)
        rep_3d = jnp.pad(rep_3d.astype(matmul_dtype), pad)

    # Layer-1 weight handling: fused K=2E matmul for small E, split-K for large E.
    fused = E < fuse_k_threshold
    if fused:
        w_args = (w1t.astype(matmul_dtype),)
        w_specs = [pl.BlockSpec((D, D), lambda i: (0, 0),
                                pipeline_mode=pl.Buffered(1))]
    else:
        w_args = (w1t[:E, :].astype(matmul_dtype), w1t[E:, :].astype(matmul_dtype))
        w_specs = [pl.BlockSpec((E, D), lambda i: (0, 0),
                                pipeline_mode=pl.Buffered(1)),
                   pl.BlockSpec((E, D), lambda i: (0, 0),
                                pipeline_mode=pl.Buffered(1))]
    w2c = w2t.astype(matmul_dtype)
    b1_2d = b1.reshape(1, D).astype(jnp.float32)
    b2_2d = b2.reshape(1, D).astype(jnp.float32)

    grid = (B_pad // tb,)

    mm_isz = jnp.dtype(matmul_dtype).itemsize
    in_isz = rep_2d.dtype.itemsize
    out_isz = jnp.dtype(out_dtype).itemsize

    # Advisory cost estimate so XLA can overlap surrounding ops with the kernel.
    w_hbm_bytes = 2 * D * D * mm_isz + 2 * D * 4
    io_bytes = B_pad * (2 * E * in_isz + D * out_isz)
    cost = pl.CostEstimate(flops=4 * B_pad * D * D, transcendentals=0,
                           bytes_accessed=w_hbm_bytes + io_bytes)

    # VMEM budget: single-buffered resident weights + biases, double-buffered
    # activation tiles, in-kernel intermediates (matmul-dtype x / h copies, f32 h and
    # layer-2 accumulator), capped by the chip's physical VMEM with 10% headroom.
    w_vmem = 2 * D * D * mm_isz + 2 * D * 4
    act_vmem = 2 * (2 * tb * E * in_isz + tb * D * out_isz)
    inter_vmem = sub_tile * D * (4 + 4 + 2 * mm_isz)
    budget = w_vmem + act_vmem + inter_vmem + (4 << 20)
    try:
        vmem_cap = getattr(pltpu.get_tpu_info(), "vmem_capacity_bytes", 64 << 20)
    except Exception:  # emulation / unexpected host: conservative v7x-safe fallback
        vmem_cap = 64 << 20
    vmem_limit = int(min(max(budget, 32 << 20), int(vmem_cap * 0.9)))

    kernel = functools.partial(_interaction_mlp_kernel, matmul_dtype=matmul_dtype,
                               fused=fused, sub_tile=sub_tile)

    out = pl.pallas_call(
        kernel,
        out_shape=jax.ShapeDtypeStruct((B_pad, D), out_dtype),
        grid_spec=pltpu.PrefetchScalarGridSpec(
            num_scalar_prefetch=0,
            grid=grid,
            in_specs=[
                pl.BlockSpec((tb, E), lambda i: (i, 0)),     # rep_2d tile (streamed)
                pl.BlockSpec((tb, E), lambda i: (i, 0)),     # rep_3d tile (streamed)
                *w_specs,                                    # W1^T (resident, 1-buffered)
                pl.BlockSpec((1, D), lambda i: (0, 0),
                             pipeline_mode=pl.Buffered(1)),  # b1 (resident, broadcasts)
                pl.BlockSpec((D, D), lambda i: (0, 0),
                             pipeline_mode=pl.Buffered(1)),  # W2^T (resident)
                pl.BlockSpec((1, D), lambda i: (0, 0),
                             pipeline_mode=pl.Buffered(1)),  # b2 (resident, broadcasts)
            ],
            out_specs=pl.BlockSpec((tb, D), lambda i: (i, 0)),  # lane-dense (D = 2E)
        ),
        compiler_params=pltpu.CompilerParams(
            dimension_semantics=("parallel",),
            vmem_limit_bytes=vmem_limit,
        ),
        cost_estimate=cost,
    )(rep_2d, rep_3d, *w_args, b1_2d, w2c, b2_2d)

    return out[:B] if B_pad != B else out


def glorot_uniform(key, shape, dtype=jnp.float32):
    fan_out, fan_in = shape  # PyTorch Linear weight is (out_features, in_features)
    limit = (6.0 / (fan_in + fan_out)) ** 0.5
    return jax.random.uniform(key, shape, dtype, minval=-limit, maxval=limit)


def reference_forward(rep_2d, rep_3d, w1, b1, w2, b2):
    x = jnp.concatenate([rep_2d, rep_3d], axis=-1)
    x = jnp.maximum(x @ w1.T + b1, 0.0)
    x = jnp.maximum(x @ w2.T + b2, 0.0)
    return x


if __name__ == "__main__":
    # Small deterministic example: batch=16, emb_dim=64 -> hidden D = 128 ('cat').
    B, E = 16, 64
    D = 2 * E

    key = jax.random.PRNGKey(0)
    k1, k2, k3, k4, k5 = jax.random.split(key, 5)

    rep_2d = jax.random.normal(k1, (B, E), jnp.float32)
    rep_3d = jax.random.normal(k2, (B, E), jnp.float32)

    # Deterministic glorot init of the two Linear layers, zero biases (reset_parameters()).
    w1 = glorot_uniform(k3, (D, D))
    b1 = jnp.zeros((D,), jnp.float32)
    w2 = glorot_uniform(k4, (D, D))
    b2 = jnp.zeros((D,), jnp.float32)

    ref = reference_forward(rep_2d, rep_3d, w1, b1, w2, b2)

    # Strict f32 path (bit-consistent with the PyTorch reference math).
    fn_f32 = jax.jit(functools.partial(interaction_mlp, matmul_dtype=jnp.float32))
    out_f32 = jax.block_until_ready(fn_f32(rep_2d, rep_3d, w1.T, b1, w2.T, b2))
    assert out_f32.shape == (B, D), out_f32.shape
    assert jnp.allclose(out_f32, ref, atol=1e-5, rtol=1e-5), \
        float(jnp.max(jnp.abs(out_f32 - ref)))

    # Default bf16-matmul path (f32 accumulation / f32 epilogue) -> looser tolerance.
    fn_bf16 = jax.jit(functools.partial(interaction_mlp, matmul_dtype=jnp.bfloat16))
    out_bf16 = jax.block_until_ready(fn_bf16(rep_2d, rep_3d, w1.T, b1, w2.T, b2))
    assert out_bf16.shape == (B, D), out_bf16.shape
    assert jnp.allclose(out_bf16, ref, atol=5e-2, rtol=5e-2), \
        float(jnp.max(jnp.abs(out_bf16 - ref)))

    # Larger batch: exercises the multi-step 'parallel' grid, the pad-free tb choice
    # (128 divides 1024) and the in-kernel row sub-tiling.
    Bl = 1024
    r2 = jax.random.normal(k5, (Bl, E), jnp.float32)
    r3 = jax.random.normal(k1, (Bl, E), jnp.float32)
    ref_l = reference_forward(r2, r3, w1, b1, w2, b2)
    out_l = jax.block_until_ready(fn_bf16(r2, r3, w1.T, b1, w2.T, b2))
    assert out_l.shape == (Bl, D), out_l.shape
    assert jnp.allclose(out_l, ref_l, atol=5e-2, rtol=5e-2), \
        float(jnp.max(jnp.abs(out_l - ref_l)))

    print("KERNEL_OK")
</pallas_src>

<mosaic_0001>
module attributes {stable_mosaic.version = 11 : i64} {
  func.func @_interaction_mlp_kernel(%arg0: i32, %arg1: memref<16x64xf32, #tpu.memory_space<vmem>>, %arg2: memref<16x64xf32, #tpu.memory_space<vmem>>, %arg3: memref<128x128xf32, #tpu.memory_space<vmem>>, %arg4: memref<1x128xf32, #tpu.memory_space<vmem>>, %arg5: memref<128x128xf32, #tpu.memory_space<vmem>>, %arg6: memref<1x128xf32, #tpu.memory_space<vmem>>, %arg7: memref<16x128xf32, #tpu.memory_space<vmem>>) attributes {dimension_semantics = [#tpu.dimension_semantics<parallel>], iteration_bounds = array<i64: 1>, scalar_prefetch = 0 : i64, scratch_operands = 0 : i64, tpu.core_type = #tpu.core_type<tc>, window_params = [{transform_indices = @transform_0, window_bounds = array<i64: 16, 64>}, {transform_indices = @transform_1, window_bounds = array<i64: 16, 64>}, {pipeline_mode = #tpu.pipeline_mode<synchronous>, transform_indices = @transform_2, window_bounds = array<i64: 128, 128>}, {pipeline_mode = #tpu.pipeline_mode<synchronous>, transform_indices = @transform_3, window_bounds = array<i64: 1, 128>}, {pipeline_mode = #tpu.pipeline_mode<synchronous>, transform_indices = @transform_4, window_bounds = array<i64: 128, 128>}, {pipeline_mode = #tpu.pipeline_mode<synchronous>, transform_indices = @transform_5, window_bounds = array<i64: 1, 128>}, {transform_indices = @transform_6, window_bounds = array<i64: 16, 128>}]} {
    %c0_i32 = arith.constant 0 : i32
    %c16_i32 = arith.constant 16 : i32
    %0 = arith.muli %c0_i32, %c16_i32 : i32
    %1 = tpu.assume_multiple %0, 16 : i32
    %2 = arith.index_cast %1 : i32 to index
    %c0 = arith.constant 0 : index
    %3 = vector.load %arg1[%2, %c0] : memref<16x64xf32, #tpu.memory_space<vmem>>, vector<16x64xf32>
    %4 = arith.index_cast %1 : i32 to index
    %c0_0 = arith.constant 0 : index
    %5 = vector.load %arg2[%4, %c0_0] : memref<16x64xf32, #tpu.memory_space<vmem>>, vector<16x64xf32>
    %6 = tpu.concatenate %3, %5 in 1 : vector<16x64xf32>, vector<16x64xf32> -> vector<16x128xf32>
    %c0_1 = arith.constant 0 : index
    %c0_2 = arith.constant 0 : index
    %7 = vector.load %arg3[%c0_1, %c0_2] : memref<128x128xf32, #tpu.memory_space<vmem>>, vector<128x128xf32>
    %cst = arith.constant dense<0.000000e+00> : vector<16x128xf32>
    %8 = tpu.matmul %6, %7, %cst {dimension_numbers = #tpu.dot_dimension_numbers<[1], [0], [0], [1], [0, 0, 1, 1], [], []>} : vector<16x128xf32>, vector<128x128xf32>, vector<16x128xf32> -> vector<16x128xf32>
    %c0_3 = arith.constant 0 : index
    %c0_4 = arith.constant 0 : index
    %9 = vector.load %arg4[%c0_3, %c0_4] : memref<1x128xf32, #tpu.memory_space<vmem>>, vector<1x128xf32>
    %10 = vector.broadcast %9 : vector<1x128xf32> to vector<16x128xf32>
    %11 = arith.addf %8, %10 : vector<16x128xf32>
    %cst_5 = arith.constant 0.000000e+00 : f32
    %12 = vector.broadcast %cst_5 : f32 to vector<16x128xf32>
    %13 = arith.maximumf %11, %12 : vector<16x128xf32>
    %c0_6 = arith.constant 0 : index
    %c0_7 = arith.constant 0 : index
    %14 = vector.load %arg5[%c0_6, %c0_7] : memref<128x128xf32, #tpu.memory_space<vmem>>, vector<128x128xf32>
    %cst_8 = arith.constant dense<0.000000e+00> : vector<16x128xf32>
    %15 = tpu.matmul %13, %14, %cst_8 {dimension_numbers = #tpu.dot_dimension_numbers<[1], [0], [0], [1], [0, 0, 1, 1], [], []>} : vector<16x128xf32>, vector<128x128xf32>, vector<16x128xf32> -> vector<16x128xf32>
    %c0_9 = arith.constant 0 : index
    %c0_10 = arith.constant 0 : index
    %16 = vector.load %arg6[%c0_9, %c0_10] : memref<1x128xf32, #tpu.memory_space<vmem>>, vector<1x128xf32>
    %17 = vector.broadcast %16 : vector<1x128xf32> to vector<16x128xf32>
    %18 = arith.addf %15, %17 : vector<16x128xf32>
    %cst_11 = arith.constant 0.000000e+00 : f32
    %19 = vector.broadcast %cst_11 : f32 to vector<16x128xf32>
    %20 = arith.maximumf %18, %19 : vector<16x128xf32>
    %21 = arith.index_cast %1 : i32 to index
    %c0_12 = arith.constant 0 : index
    %22 = vector.load %arg7[%21, %c0_12] : memref<16x128xf32, #tpu.memory_space<vmem>>, vector<16x128xf32>
    tpu.vector_store %arg7[%21, %c0_12], %20 {strides = array<i32>} : memref<16x128xf32, #tpu.memory_space<vmem>>, vector<16x128xf32>,
    %c1_i32 = arith.constant 1 : i32
    return
  }
  func.func @transform_0(%arg0: i32) -> (i32, i32) {
    %c0_i32 = arith.constant 0 : i32
    %c0_i32_0 = arith.constant 0 : i32
    return %arg0, %c0_i32 : i32, i32
  }
  func.func @transform_1(%arg0: i32) -> (i32, i32) {
    %c0_i32 = arith.constant 0 : i32
    %c0_i32_0 = arith.constant 0 : i32
    return %arg0, %c0_i32 : i32, i32
  }
  func.func @transform_2(%arg0: i32) -> (i32, i32) {
    %c0_i32 = arith.constant 0 : i32
    %c0_i32_0 = arith.constant 0 : i32
    %c0_i32_1 = arith.constant 0 : i32
    return %c0_i32, %c0_i32_0 : i32, i32
  }
  func.func @transform_3(%arg0: i32) -> (i32, i32) {
    %c0_i32 = arith.constant 0 : i32
    %c0_i32_0 = arith.constant 0 : i32
    %c0_i32_1 = arith.constant 0 : i32
    return %c0_i32, %c0_i32_0 : i32, i32
  }
  func.func @transform_4(%arg0: i32) -> (i32, i32) {
    %c0_i32 = arith.constant 0 : i32
    %c0_i32_0 = arith.constant 0 : i32
    %c0_i32_1 = arith.constant 0 : i32
    return %c0_i32, %c0_i32_0 : i32, i32
  }
  func.func @transform_5(%arg0: i32) -> (i32, i32) {
    %c0_i32 = arith.constant 0 : i32
    %c0_i32_0 = arith.constant 0 : i32
    %c0_i32_1 = arith.constant 0 : i32
    return %c0_i32, %c0_i32_0 : i32, i32
  }
  func.func @transform_6(%arg0: i32) -> (i32, i32) {
    %c0_i32 = arith.constant 0 : i32
    %c0_i32_0 = arith.constant 0 : i32
    return %arg0, %c0_i32 : i32, i32
  }
}

</mosaic_0001>

<bundles_post_ra>
// kernel: interaction_mlp.1
= control target key start
LH: loop header
LB: loop body
LE: loop exit
PB: predicated region body
PF: predicated region fallthrough
CT: control target
= control target key end

     0   :  { %11 = vsyncpa [#allocation3], 0  ;;  %s464_s0 = inlined_call_operand.hbm [shape: f32[16,64], index: 0, kind: input, shape index: {}]   ;;  %s465_s1 = inlined_call_operand.hbm [shape: f32[16,64], index: 1, kind: input, shape index: {}]   ;;  %s466_s2 = inlined_call_operand.hbm [shape: f32[128,128], index: 2, kind: input, shape index: {}]   ;;  %s467_s3 = inlined_call_operand.vmem [shape: f32[1,128], index: 3, kind: input, shape index: {}]   ;;  %s468_s4 = inlined_call_operand.hbm [shape: f32[128,128], index: 4, kind: input, shape index: {}]   ;;  %s469_s5 = inlined_call_operand.vmem [shape: f32[1,128], index: 5, kind: input, shape index: {}]   ;;  %s470_s6 = inlined_call_operand.hbm [shape: f32[16,128], index: 6, kind: output, shape index: {}]  }
   0x1   :  { %12 = vsyncpa [#allocation6], 0 }
   0x2   :  { %13 = vsyncpa [#allocation9], 0 }
   0x3   :  { %14 = vsyncpa [#allocation4], 0  ;;  %s32_s23 = sshll.u32 %s465_s1, 4  ;;  %s385_s24 = smov [#allocation5]   ;;  %s33_s23 = int_to_ptr.hbm [resolvable:$true] %s32_s23 }
   0x4   :  { %s34_s25 = sshll.u32 %s385_s24, 4  ;;  %s19_s28 = sshll.u32 %s464_s0, 4  ;;  %s35_s25 = int_to_ptr.vmem [resolvable:$true] %s34_s25  ;;  %s20_s28 = int_to_ptr.hbm [resolvable:$true] %s19_s28 }
   0x5   :  { %s386_s29 = smov 128   ;;  %s387_s30 = smov 8  }
   0x6   :  { %40 = dma.hbm_to_vmem [thread:$0]  %s33_s23, 256, %s35_s25, [#allocation6], %s386_s29, %s386_s29, %s387_s30  }
   0x7   :  { %s388_s7 = smov [#allocation2]   ;;  %s45_s1 = sshll.u32 %s466_s2, 4  ;;  %s46_s1 = int_to_ptr.hbm [resolvable:$true] %s45_s1 }
   0x8   :  { %s21_s8 = sshll.u32 %s388_s7, 4  ;;  %s60_s12 = sshll.u32 %s468_s4, 4  ;;  %s22_s8 = int_to_ptr.vmem [resolvable:$true] %s21_s8  ;;  %s61_s12 = int_to_ptr.hbm [resolvable:$true] %s60_s12 }
   0x9   :  { %27 = dma.hbm_to_vmem [thread:$0]  %s20_s28, 256, %s22_s8, [#allocation3], %s386_s29, %s386_s29, %s387_s30  }
   0xa   :  { %s389_s13 = smov [#allocation7]   ;;  %s390_s15 = smov [#allocation8]  }
   0xb   :  { %s47_s14 = sshll.u32 %s389_s13, 4  ;;  %s62_s2 = sshll.u32 %s390_s15, 4  ;;  %s48_s14 = int_to_ptr.vmem [resolvable:$true] %s47_s14  ;;  %s63_s2 = int_to_ptr.vmem [resolvable:$true] %s62_s2 }
   0xc   :  { %53 = dma.hbm_to_vmem [thread:$0]  %s46_s1, 2048, %s48_s14, [#allocation6], %s386_s29, %s386_s29, %s387_s30  }
   0xd   :  { %68 = dma.hbm_to_vmem [thread:$0]  %s61_s12, 2048, %s63_s2, [#allocation9], %s386_s29, %s386_s29, %s387_s30  }
   0xe   :  { %377 = dma.done.wait [#allocation3], 256  }
   0xf   :  { %378 = vsyncadd [#allocation3], 4294967040 }
  0x10   :  { %379 = dma.done.wait [#allocation6], 2304  }
  0x11   :  { %380 = vsyncadd [#allocation6], 4294964992 }
  0x12   :  { %381 = dma.done.wait [#allocation9], 2048  }
  0x13   :  { %382 = vsyncadd [#allocation9], 4294965248  ;;  %v90_v0 = vld [vmem:[#allocation5 + $0x8] sm:$0xff]  ;;  %s391_s4 = smov 64   ;;  %v116_v2 = vld [vmem:[#allocation7 + $0x70] sm:$0xff]  ;;  %vm99_vm0 = vcmask 523264  }
  0x14   :  { %v117_v1 = vld [vmem:[#allocation7 + $0x78] sm:$0xff]  ;;  %95 = vrot.lane.b32.xlu0 %v90_v0, %s391_s4  ;;  %v115_v3 = vld [vmem:[#allocation7 + $0x68] sm:$0xff]  ;;  %v114_v4 = vld [vmem:[#allocation7 + $0x60] sm:$0xff]  ;;  %s392_s20 = smov [#allocation10]   ;;  %s200_s23 = sshll.u32 %s470_s6, 4  ;;  %s201_s23 = int_to_ptr.hbm [resolvable:$true] %s200_s23 }
  0x15   :  { %215 = vmatpush.msra.mxu2 %v117_v1  ;;  %122 = vmatpush.msra.mxu0 %v117_v1  ;;  %v89_v5 = vld [vmem:[#allocation5] sm:$0xff]  ;;  %v113_v6 = vld [vmem:[#allocation7 + $0x58] sm:$0xff]  ;;  %v111_v8 = vld [vmem:[#allocation7 + $0x48] sm:$0xff]  ;;  %s198_s21 = sshll.u32 %s392_s20, 4  ;;  %s199_s21 = int_to_ptr.vmem [resolvable:$true] %s198_s21 }
  0x16   :  { %v112_v7 = vld [vmem:[#allocation7 + $0x50] sm:$0xff]  ;;  %v110_v9 = vld [vmem:[#allocation7 + $0x40] sm:$0xff]  ;;  %v109_v10 = vld [vmem:[#allocation7 + $0x38] sm:$0xff] }
  0x17   :  { %216 = vmatpush.msra.mxu2 %v116_v2  ;;  %123 = vmatpush.msra.mxu0 %v116_v2  ;;  %v108_v11 = vld [vmem:[#allocation7 + $0x30] sm:$0xff]  ;;  %v107_v12 = vld [vmem:[#allocation7 + $0x28] sm:$0xff]  ;;  %v106_v13 = vld [vmem:[#allocation7 + $0x20] sm:$0xff] }
  0x18   :  { %v105_v14 = vld [vmem:[#allocation7 + $0x18] sm:$0xff]  ;;  %v104_v15 = vld [vmem:[#allocation7 + $0x10] sm:$0xff]  ;;  %v103_v16 = vld [vmem:[#allocation7 + $0x8] sm:$0xff] }
  0x19   :  { %217 = vmatpush.msra.mxu2 %v115_v3  ;;  %124 = vmatpush.msra.mxu0 %v115_v3  ;;  %v102_v17 = vld [vmem:[#allocation7] sm:$0xff]  ;;  %v162_v18 = vld [vmem:[#allocation8 + $0x78] sm:$0xff]  ;;  %v161_v19 = vld [vmem:[#allocation8 + $0x70] sm:$0xff] }
  0x1a   :  { %231 = vmatpush.msra.mxu3 %v162_v18  ;;  %167 = vmatpush.msra.mxu1 %v162_v18  ;;  %v160_v20 = vld [vmem:[#allocation8 + $0x68] sm:$0xff]  ;;  %v159_v21 = vld [vmem:[#allocation8 + $0x60] sm:$0xff]  ;;  %v158_v22 = vld [vmem:[#allocation8 + $0x58] sm:$0xff] }
  0x1b   :  { %218 = vmatpush.msra.mxu2 %v114_v4  ;;  %125 = vmatpush.msra.mxu0 %v114_v4  ;;  %v157_v23 = vld [vmem:[#allocation8 + $0x50] sm:$0xff]  ;;  %v156_v24 = vld [vmem:[#allocation8 + $0x48] sm:$0xff]  ;;  %v155_v25 = vld [vmem:[#allocation8 + $0x40] sm:$0xff] }
  0x1c   :  { %93 = vrot.lane.b32.xlu0 %v89_v5, %s391_s4  ;;  %232 = vmatpush.msra.mxu3 %v161_v19  ;;  %v154_v26 = vld [vmem:[#allocation8 + $0x38] sm:$0xff]  ;;  %v153_v27 = vld [vmem:[#allocation8 + $0x30] sm:$0xff]  ;;  %v152_v28 = vld [vmem:[#allocation8 + $0x28] sm:$0xff] }
  0x1d   :  { %219 = vmatpush.msra.mxu2 %v113_v6  ;;  %126 = vmatpush.msra.mxu0 %v113_v6  ;;  %v88_v29 = vld [vmem:[#allocation2 + $0x8] sm:$0xff]  ;;  %v151_v30 = vld [vmem:[#allocation8 + $0x20] sm:$0xff]  ;;  %v150_v32 = vld [vmem:[#allocation8 + $0x18] sm:$0xff] }
  0x1e   :  { %168 = vmatpush.msra.mxu1 %v161_v19  ;;  %233 = vmatpush.msra.mxu3 %v160_v20  ;;  %v87_v34 = vld [vmem:[#allocation2] sm:$0xff]  ;;  %v149_v37 = vld [vmem:[#allocation8 + $0x10] sm:$0xff]  ;;  %v148_v38 = vld [vmem:[#allocation8 + $0x8] sm:$0xff] }
  0x1f   :  { %220 = vmatpush.msra.mxu2 %v112_v7  ;;  %127 = vmatpush.msra.mxu0 %v112_v7  ;;  %v147_v39 = vld [vmem:[#allocation8] sm:$0xff] }
  0x20   :  { %169 = vmatpush.msra.mxu1 %v160_v20  ;;  %234 = vmatpush.msra.mxu3 %v159_v21  ;;  %v255_v40 = vld [vmem:[%s467_s3] ss:$0 sm:$0xff] }
  0x21   :  { %221 = vmatpush.msra.mxu2 %v111_v8  ;;  %128 = vmatpush.msra.mxu0 %v111_v8  ;;  %v256_v47 = vld [vmem:[%s469_s5] ss:$0 sm:$0xff] }
  0x22   :  { %170 = vmatpush.msra.mxu1 %v159_v21  ;;  %235 = vmatpush.msra.mxu3 %v158_v22 }
  0x23   :  { %222 = vmatpush.msra.mxu2 %v110_v9  ;;  %129 = vmatpush.msra.mxu0 %v110_v9 }
  0x24   :  { %171 = vmatpush.msra.mxu1 %v158_v22  ;;  %236 = vmatpush.msra.mxu3 %v157_v23 }
  0x25   :  { %223 = vmatpush.msra.mxu2 %v109_v10  ;;  %130 = vmatpush.msra.mxu0 %v109_v10 }
  0x26   :  { %172 = vmatpush.msra.mxu1 %v157_v23  ;;  %237 = vmatpush.msra.mxu3 %v156_v24 }
  0x27   :  { %224 = vmatpush.msra.mxu2 %v108_v11  ;;  %131 = vmatpush.msra.mxu0 %v108_v11 }
  0x28   :  { %173 = vmatpush.msra.mxu1 %v156_v24  ;;  %238 = vmatpush.msra.mxu3 %v155_v25 }
  0x29   :  { %225 = vmatpush.msra.mxu2 %v107_v12  ;;  %132 = vmatpush.msra.mxu0 %v107_v12 }
  0x2a   :  { %174 = vmatpush.msra.mxu1 %v155_v25  ;;  %239 = vmatpush.msra.mxu3 %v154_v26 }
  0x2b   :  { %226 = vmatpush.msra.mxu2 %v106_v13  ;;  %133 = vmatpush.msra.mxu0 %v106_v13 }
  0x2c   :  { %175 = vmatpush.msra.mxu1 %v154_v26  ;;  %240 = vmatpush.msra.mxu3 %v153_v27 }
  0x2d   :  { %227 = vmatpush.msra.mxu2 %v105_v14  ;;  %134 = vmatpush.msra.mxu0 %v105_v14 }
  0x2e   :  { %176 = vmatpush.msra.mxu1 %v153_v27  ;;  %241 = vmatpush.msra.mxu3 %v152_v28 }
  0x2f   :  { %228 = vmatpush.msra.mxu2 %v104_v15  ;;  %135 = vmatpush.msra.mxu0 %v104_v15 }
  0x30   :  { %177 = vmatpush.msra.mxu1 %v152_v28  ;;  %242 = vmatpush.msra.mxu3 %v151_v30 }
  0x31   :  { %229 = vmatpush.msra.mxu2 %v103_v16  ;;  %136 = vmatpush.msra.mxu0 %v103_v16 }
  0x32   :  { %178 = vmatpush.msra.mxu1 %v151_v30  ;;  %243 = vmatpush.msra.mxu3 %v150_v32 }
  0x33   :  { %230 = vmatpush.msra.mxu2 %v102_v17  ;;  %137 = vmatpush.msra.mxu0 %v102_v17 }
  0x34   :  { %179 = vmatpush.msra.mxu1 %v150_v32  ;;  %244 = vmatpush.msra.mxu3 %v149_v37 }
  0x36   :  { %180 = vmatpush.msra.mxu1 %v149_v37  ;;  %245 = vmatpush.msra.mxu3 %v148_v38 }
  0x38   :  { %181 = vmatpush.msra.mxu1 %v148_v38  ;;  %246 = vmatpush.msra.mxu3 %v147_v39 }
  0x3a   :  { %182 = vmatpush.msra.mxu1 %v147_v39 }
  0x86   :  { %v96_v31 = vpop.permute.xlu0 %95 }
  0x87   :  { %v101_v33 = vsel %vm99_vm0, %v88_v29, %v96_v31 }
  0x88   :  { %141 = vmatmul.f32.vlgmr.msra.gmra.mxu2 %v101_v33 }
  0x8e   :  { %v94_v35 = vpop.permute.xlu0 %93 }
  0x8f   :  { %v100_v36 = vsel %vm99_vm0, %v87_v34, %v94_v35 }
  0x90   :  { %138 = vmatmul.f32.vlgmr.msra.gmra.mxu0 %v100_v36 }
 0x10b   :  { %v142_v41 = vpop.f32.mrf.mxu2 }
 0x10c   :  { %v143_v42 = vadd.f32 %v255_v40, %v142_v41 }
 0x10d   :  { %v139_v43 = vpop.f32.mrf.mxu0 }
 0x10e   :  { %v146_v44 = vmax.f32 %v143_v42, 0.0  ;;  %v140_v45 = vadd.f32 %v255_v40, %v139_v43 }
 0x110   :  { %186 = vmatmul.f32.vlgmr.msra.gmra.mxu3 %v146_v44  ;;  %v145_v46 = vmax.f32 %v140_v45, 0.0 }
 0x112   :  { %183 = vmatmul.f32.vlgmr.msra.gmra.mxu1 %v145_v46 }
 0x18f   :  { %v184_v48 = vpop.f32.mrf.mxu1 }
 0x190   :  { %v185_v49 = vadd.f32 %v256_v47, %v184_v48 }
 0x192   :  { %v190_v50 = vmax.f32 %v185_v49, 0.0 }
 0x193   :  { %v187_v51 = vpop.f32.mrf.mxu3 }
 0x194   :  { %192 = vst [vmem:[#allocation10] sm:$0xff] %v190_v50  ;;  %v188_v52 = vadd.f32 %v256_v47, %v187_v51 }
 0x196   :  { %v191_v53 = vmax.f32 %v188_v52, 0.0 }
 0x198   :  { %193 = vst [vmem:[#allocation10 + $0x8] sm:$0xff] %v191_v53 }
 0x199   :  { %206 = dma.vmem_to_hbm [thread:$0]  %s199_s21, 256, %s201_s23, [#allocation4], %s386_s29, %s386_s29, %s387_s30  }
 0x19a   :  { %383 = dma.done.wait [#allocation4], 256  }
 0x19b   :  { %384 = vsyncadd [#allocation4], 4294967040 }
 0x19c   :  { %211 = vsyncpa [#allocation3], 1 }
 0x19d   :  { %212 = vsyncpa [#allocation6], 1 }
 0x19e   :  { %213 = vsyncpa [#allocation9], 1 }
 0x19f   :  { %214 = vsyncpa [#allocation4], 1 }

</bundles_post_ra>
